<compile_context>
chip_gen: v5e
topology: v5e:2x2
jax: 0.10.0
libtpu: 0.0.40
codegen_flags: <defaults>
</compile_context>

<pallas_src>
import functools

import jax
import jax.numpy as jnp
from jax.experimental import pallas as pl
from jax.experimental.pallas import tpu as pltpu

_OUT_PAD = 128  # lane-dense padded width for the final layer's output


def _mlp_kernel(x_ref,
                w0_ref, b0_ref,
                w1_ref, b1_ref,
                w2_ref, b2_ref,
                w3_ref, b3_ref,
                o_ref):
    def sigmoid(v):
        # exp -> EUP, approximate reciprocal -> EUP; keeps the VALU slot free.
        return pl.reciprocal(1.0 + jnp.exp(-v), approx=True)

    x = x_ref[...].astype(jnp.float32)

    h = sigmoid(jnp.dot(x, w0_ref[...], preferred_element_type=jnp.float32) + b0_ref[...])
    h = sigmoid(jnp.dot(h, w1_ref[...], preferred_element_type=jnp.float32) + b1_ref[...])
    h = sigmoid(jnp.dot(h, w2_ref[...], preferred_element_type=jnp.float32) + b2_ref[...])
    # Final layer: weight is pre-padded to (7, 128) so this store is lane-dense.
    h = jnp.dot(h, w3_ref[...], preferred_element_type=jnp.float32) + b3_ref[...]

    o_ref[...] = h.astype(o_ref.dtype)


def prepare_params(params):
    """One-time layout glue: torch (out, in) weights -> (in, out); biases -> (1, out).

    The last layer is zero-padded to 128 output lanes for a lane-dense store.
    Call this ONCE and reuse the result across forward calls.
    """
    flat = []
    for i, name in enumerate(("layer0", "layer1", "layer2", "layer3")):
        w, b = params[name]
        w = jnp.asarray(w, jnp.float32).T          # (in, out)
        b = jnp.asarray(b, jnp.float32)[None, :]   # (1, out)
        if i == 3:
            pad = _OUT_PAD - w.shape[1]
            w = jnp.pad(w, ((0, 0), (0, pad)))
            b = jnp.pad(b, ((0, 0), (0, pad)))
        flat.append(w)
        flat.append(b)
    return tuple(flat)


def _round_up(n, m):
    return ((n + m - 1) // m) * m


@functools.partial(jax.jit, static_argnames=("block_batch",))
def mlp_forward(x, prepared, *, block_batch=512):
    """x: [B, 28] float32.  prepared: output of prepare_params()."""
    x = jnp.asarray(x, jnp.float32)
    B = x.shape[0]

    # Batch tile: multiple of 8 (sublane), capped by the requested block size.
    TB = _round_up(min(block_batch, B), 8)
    Bp = _round_up(B, TB)
    if Bp != B:
        x = jnp.pad(x, ((0, Bp - B), (0, 0)))
    grid = (Bp // TB,)

    (w0, b0, w1, b1, w2, b2, w3, b3) = prepared

    def resident(arr):
        # Full-array block, constant index_map -> DMA'd once, stays in VMEM.
        return pl.BlockSpec(arr.shape, lambda i: (0, 0))

    out = pl.pallas_call(
        _mlp_kernel,
        out_shape=jax.ShapeDtypeStruct((Bp, _OUT_PAD), jnp.float32),
        grid=grid,
        in_specs=[
            pl.BlockSpec((TB, 28), lambda i: (i, 0)),  # x: batch-tiled, pipelined
            resident(w0), resident(b0),
            resident(w1), resident(b1),
            resident(w2), resident(b2),
            resident(w3), resident(b3),
        ],
        out_specs=pl.BlockSpec((TB, _OUT_PAD), lambda i: (i, 0)),
        compiler_params=pltpu.CompilerParams(
            dimension_semantics=("parallel",),  # shard batch grid across TCs on v7x
        ),
    )(x, w0, b0, w1, b1, w2, b2, w3, b3)

    return out[:B, :7]


def _init_params(key):
    """Deterministic synthetic init with PyTorch nn.Linear shapes (out, in)."""
    shapes = {
        "layer0": (28, 28),
        "layer1": (14, 28),
        "layer2": (7, 14),
        "layer3": (7, 7),
    }
    params = {}
    for i, (name, (out_f, in_f)) in enumerate(shapes.items()):
        kw, kb = jax.random.split(jax.random.fold_in(key, i))
        bound = 1.0 / (in_f ** 0.5)  # mimic torch's kaiming-uniform-ish bound
        w = jax.random.uniform(kw, (out_f, in_f), jnp.float32, -bound, bound)
        b = jax.random.uniform(kb, (out_f,), jnp.float32, -bound, bound)
        params[name] = (w, b)
    return params


def _reference(x, params):
    h = x
    for i, name in enumerate(("layer0", "layer1", "layer2", "layer3")):
        w, b = params[name]
        h = h @ w.T + b
        if i < 3:
            h = jax.nn.sigmoid(h)
    return h


if __name__ == "__main__":
    key = jax.random.PRNGKey(0)
    kx, kp = jax.random.split(key)

    batch = 64
    x = jax.random.normal(kx, (batch, 28), jnp.float32)
    params = _init_params(kp)

    prepared = prepare_params(params)          # one-time layout glue
    out = mlp_forward(x, prepared, block_batch=16)   # grid of 4 batch tiles
    out = jax.block_until_ready(out)

    ref = _reference(x, params)
    assert out.shape == (batch, 7), out.shape
    # Tolerance relaxed vs. exact sigmoid because of approx reciprocal (~2^-12 rel err).
    assert jnp.allclose(out, ref, atol=5e-3, rtol=5e-3), float(jnp.max(jnp.abs(out - ref)))

    print("KERNEL_OK")
</pallas_src>

<mosaic_0001>
module attributes {stable_mosaic.version = 11 : i64} {
  func.func @_mlp_kernel(%arg0: i32, %arg1: memref<16x28xf32, #tpu.memory_space<vmem>>, %arg2: memref<28x28xf32, #tpu.memory_space<vmem>>, %arg3: memref<1x28xf32, #tpu.memory_space<vmem>>, %arg4: memref<28x14xf32, #tpu.memory_space<vmem>>, %arg5: memref<1x14xf32, #tpu.memory_space<vmem>>, %arg6: memref<14x7xf32, #tpu.memory_space<vmem>>, %arg7: memref<1x7xf32, #tpu.memory_space<vmem>>, %arg8: memref<7x128xf32, #tpu.memory_space<vmem>>, %arg9: memref<1x128xf32, #tpu.memory_space<vmem>>, %arg10: memref<16x128xf32, #tpu.memory_space<vmem>>) attributes {dimension_semantics = [#tpu.dimension_semantics<parallel>], iteration_bounds = array<i64: 4>, scalar_prefetch = 0 : i64, scratch_operands = 0 : i64, tpu.core_type = #tpu.core_type<tc>, window_params = [{transform_indices = @transform_0, window_bounds = array<i64: 16, 28>}, {pipeline_mode = #tpu.pipeline_mode<synchronous>, transform_indices = @transform_1, window_bounds = array<i64: 28, 28>}, {pipeline_mode = #tpu.pipeline_mode<synchronous>, transform_indices = @transform_2, window_bounds = array<i64: 1, 28>}, {pipeline_mode = #tpu.pipeline_mode<synchronous>, transform_indices = @transform_3, window_bounds = array<i64: 28, 14>}, {pipeline_mode = #tpu.pipeline_mode<synchronous>, transform_indices = @transform_4, window_bounds = array<i64: 1, 14>}, {pipeline_mode = #tpu.pipeline_mode<synchronous>, transform_indices = @transform_5, window_bounds = array<i64: 14, 7>}, {pipeline_mode = #tpu.pipeline_mode<synchronous>, transform_indices = @transform_6, window_bounds = array<i64: 1, 7>}, {pipeline_mode = #tpu.pipeline_mode<synchronous>, transform_indices = @transform_7, window_bounds = array<i64: 7, 128>}, {pipeline_mode = #tpu.pipeline_mode<synchronous>, transform_indices = @transform_8, window_bounds = array<i64: 1, 128>}, {transform_indices = @transform_9, window_bounds = array<i64: 16, 128>}]} {
    %c0 = arith.constant 0 : index
    %c0_0 = arith.constant 0 : index
    %0 = vector.load %arg1[%c0, %c0_0] : memref<16x28xf32, #tpu.memory_space<vmem>>, vector<16x28xf32>
    %c0_1 = arith.constant 0 : index
    %c0_2 = arith.constant 0 : index
    %1 = vector.load %arg2[%c0_1, %c0_2] : memref<28x28xf32, #tpu.memory_space<vmem>>, vector<28x28xf32>
    %cst = arith.constant dense<0.000000e+00> : vector<16x28xf32>
    %2 = tpu.matmul %0, %1, %cst {dimension_numbers = #tpu.dot_dimension_numbers<[1], [0], [0], [1], [0, 0, 1, 1], [], []>} : vector<16x28xf32>, vector<28x28xf32>, vector<16x28xf32> -> vector<16x28xf32>
    %c0_3 = arith.constant 0 : index
    %c0_4 = arith.constant 0 : index
    %3 = vector.load %arg3[%c0_3, %c0_4] : memref<1x28xf32, #tpu.memory_space<vmem>>, vector<1x28xf32>
    %4 = vector.broadcast %3 : vector<1x28xf32> to vector<16x28xf32>
    %5 = arith.addf %2, %4 : vector<16x28xf32>
    %cst_5 = arith.constant 0.000000e+00 : f32
    %6 = vector.broadcast %cst_5 : f32 to vector<16x28xf32>
    %7 = arith.subf %6, %5 : vector<16x28xf32>
    %8 = math.exp %7 : vector<16x28xf32>
    %cst_6 = arith.constant 1.000000e+00 : f32
    %9 = vector.broadcast %cst_6 : f32 to vector<16x28xf32>
    %10 = arith.addf %9, %8 : vector<16x28xf32>
    %11 = tpu.reciprocal %10 {approx = true} : vector<16x28xf32> -> vector<16x28xf32>
    %c0_7 = arith.constant 0 : index
    %c0_8 = arith.constant 0 : index
    %12 = vector.load %arg4[%c0_7, %c0_8] : memref<28x14xf32, #tpu.memory_space<vmem>>, vector<28x14xf32>
    %cst_9 = arith.constant dense<0.000000e+00> : vector<16x14xf32>
    %13 = tpu.matmul %11, %12, %cst_9 {dimension_numbers = #tpu.dot_dimension_numbers<[1], [0], [0], [1], [0, 0, 1, 1], [], []>} : vector<16x28xf32>, vector<28x14xf32>, vector<16x14xf32> -> vector<16x14xf32>
    %c0_10 = arith.constant 0 : index
    %c0_11 = arith.constant 0 : index
    %14 = vector.load %arg5[%c0_10, %c0_11] : memref<1x14xf32, #tpu.memory_space<vmem>>, vector<1x14xf32>
    %15 = vector.broadcast %14 : vector<1x14xf32> to vector<16x14xf32>
    %16 = arith.addf %13, %15 : vector<16x14xf32>
    %cst_12 = arith.constant 0.000000e+00 : f32
    %17 = vector.broadcast %cst_12 : f32 to vector<16x14xf32>
    %18 = arith.subf %17, %16 : vector<16x14xf32>
    %19 = math.exp %18 : vector<16x14xf32>
    %cst_13 = arith.constant 1.000000e+00 : f32
    %20 = vector.broadcast %cst_13 : f32 to vector<16x14xf32>
    %21 = arith.addf %20, %19 : vector<16x14xf32>
    %22 = tpu.reciprocal %21 {approx = true} : vector<16x14xf32> -> vector<16x14xf32>
    %c0_14 = arith.constant 0 : index
    %c0_15 = arith.constant 0 : index
    %23 = vector.load %arg6[%c0_14, %c0_15] : memref<14x7xf32, #tpu.memory_space<vmem>>, vector<14x7xf32>
    %cst_16 = arith.constant dense<0.000000e+00> : vector<16x7xf32>
    %24 = tpu.matmul %22, %23, %cst_16 {dimension_numbers = #tpu.dot_dimension_numbers<[1], [0], [0], [1], [0, 0, 1, 1], [], []>} : vector<16x14xf32>, vector<14x7xf32>, vector<16x7xf32> -> vector<16x7xf32>
    %c0_17 = arith.constant 0 : index
    %c0_18 = arith.constant 0 : index
    %25 = vector.load %arg7[%c0_17, %c0_18] : memref<1x7xf32, #tpu.memory_space<vmem>>, vector<1x7xf32>
    %26 = vector.broadcast %25 : vector<1x7xf32> to vector<16x7xf32>
    %27 = arith.addf %24, %26 : vector<16x7xf32>
    %cst_19 = arith.constant 0.000000e+00 : f32
    %28 = vector.broadcast %cst_19 : f32 to vector<16x7xf32>
    %29 = arith.subf %28, %27 : vector<16x7xf32>
    %30 = math.exp %29 : vector<16x7xf32>
    %cst_20 = arith.constant 1.000000e+00 : f32
    %31 = vector.broadcast %cst_20 : f32 to vector<16x7xf32>
    %32 = arith.addf %31, %30 : vector<16x7xf32>
    %33 = tpu.reciprocal %32 {approx = true} : vector<16x7xf32> -> vector<16x7xf32>
    %c0_21 = arith.constant 0 : index
    %c0_22 = arith.constant 0 : index
    %34 = vector.load %arg8[%c0_21, %c0_22] : memref<7x128xf32, #tpu.memory_space<vmem>>, vector<7x128xf32>
    %cst_23 = arith.constant dense<0.000000e+00> : vector<16x128xf32>
    %35 = tpu.matmul %33, %34, %cst_23 {dimension_numbers = #tpu.dot_dimension_numbers<[1], [0], [0], [1], [0, 0, 1, 1], [], []>} : vector<16x7xf32>, vector<7x128xf32>, vector<16x128xf32> -> vector<16x128xf32>
    %c0_24 = arith.constant 0 : index
    %c0_25 = arith.constant 0 : index
    %36 = vector.load %arg9[%c0_24, %c0_25] : memref<1x128xf32, #tpu.memory_space<vmem>>, vector<1x128xf32>
    %37 = vector.broadcast %36 : vector<1x128xf32> to vector<16x128xf32>
    %38 = arith.addf %35, %37 : vector<16x128xf32>
    %c0_26 = arith.constant 0 : index
    %c0_27 = arith.constant 0 : index
    %39 = vector.load %arg10[%c0_26, %c0_27] : memref<16x128xf32, #tpu.memory_space<vmem>>, vector<16x128xf32>
    tpu.vector_store %arg10[%c0_26, %c0_27], %38 {strides = array<i32>} : memref<16x128xf32, #tpu.memory_space<vmem>>, vector<16x128xf32>,
    return
  }
  func.func @transform_0(%arg0: i32) -> (i32, i32) {
    %c0_i32 = arith.constant 0 : i32
    %c0_i32_0 = arith.constant 0 : i32
    return %arg0, %c0_i32 : i32, i32
  }
  func.func @transform_1(%arg0: i32) -> (i32, i32) {
    %c0_i32 = arith.constant 0 : i32
    %c0_i32_0 = arith.constant 0 : i32
    %c0_i32_1 = arith.constant 0 : i32
    return %c0_i32, %c0_i32_0 : i32, i32
  }
  func.func @transform_2(%arg0: i32) -> (i32, i32) {
    %c0_i32 = arith.constant 0 : i32
    %c0_i32_0 = arith.constant 0 : i32
    %c0_i32_1 = arith.constant 0 : i32
    return %c0_i32, %c0_i32_0 : i32, i32
  }
  func.func @transform_3(%arg0: i32) -> (i32, i32) {
    %c0_i32 = arith.constant 0 : i32
    %c0_i32_0 = arith.constant 0 : i32
    %c0_i32_1 = arith.constant 0 : i32
    return %c0_i32, %c0_i32_0 : i32, i32
  }
  func.func @transform_4(%arg0: i32) -> (i32, i32) {
    %c0_i32 = arith.constant 0 : i32
    %c0_i32_0 = arith.constant 0 : i32
    %c0_i32_1 = arith.constant 0 : i32
    return %c0_i32, %c0_i32_0 : i32, i32
  }
  func.func @transform_5(%arg0: i32) -> (i32, i32) {
    %c0_i32 = arith.constant 0 : i32
    %c0_i32_0 = arith.constant 0 : i32
    %c0_i32_1 = arith.constant 0 : i32
    return %c0_i32, %c0_i32_0 : i32, i32
  }
  func.func @transform_6(%arg0: i32) -> (i32, i32) {
    %c0_i32 = arith.constant 0 : i32
    %c0_i32_0 = arith.constant 0 : i32
    %c0_i32_1 = arith.constant 0 : i32
    return %c0_i32, %c0_i32_0 : i32, i32
  }
  func.func @transform_7(%arg0: i32) -> (i32, i32) {
    %c0_i32 = arith.constant 0 : i32
    %c0_i32_0 = arith.constant 0 : i32
    %c0_i32_1 = arith.constant 0 : i32
    return %c0_i32, %c0_i32_0 : i32, i32
  }
  func.func @transform_8(%arg0: i32) -> (i32, i32) {
    %c0_i32 = arith.constant 0 : i32
    %c0_i32_0 = arith.constant 0 : i32
    %c0_i32_1 = arith.constant 0 : i32
    return %c0_i32, %c0_i32_0 : i32, i32
  }
  func.func @transform_9(%arg0: i32) -> (i32, i32) {
    %c0_i32 = arith.constant 0 : i32
    %c0_i32_0 = arith.constant 0 : i32
    return %arg0, %c0_i32 : i32, i32
  }
}

</mosaic_0001>

<bundles_post_ra>
// kernel: mlp_forward.1
= control target key start
LH: loop header
LB: loop body
LE: loop exit
PB: predicated region body
PF: predicated region fallthrough
CT: control target
= control target key end

     0   :  { %s704_s30 = smov 0   ;;  %s779_s0 = inlined_call_operand.vmem [shape: f32[64,28], index: 0, kind: input, shape index: {}]   ;;  %s780_s1 = inlined_call_operand.vmem [shape: f32[28,28], index: 1, kind: input, shape index: {}]   ;;  %s781_s2 = inlined_call_operand.vmem [shape: f32[1,28], index: 2, kind: input, shape index: {}]   ;;  %s782_s3 = inlined_call_operand.vmem [shape: f32[28,14], index: 3, kind: input, shape index: {}]   ;;  %s783_s4 = inlined_call_operand.vmem [shape: f32[1,14], index: 4, kind: input, shape index: {}]   ;;  %s784_s5 = inlined_call_operand.vmem [shape: f32[14,7], index: 5, kind: input, shape index: {}]   ;;  %s785_s6 = inlined_call_operand.vmem [shape: f32[1,7], index: 6, kind: input, shape index: {}]   ;;  %s786_s7 = inlined_call_operand.vmem [shape: f32[7,128], index: 7, kind: input, shape index: {}]   ;;  %s787_s8 = inlined_call_operand.vmem [shape: f32[1,128], index: 8, kind: input, shape index: {}]   ;;  %s788_s9 = inlined_call_operand.vmem [shape: f32[64,128], index: 9, kind: output, shape index: {}]  }
   0x1 LB: > { %s587_s10 = sadd.s32 4294967295, %s652_s30   ;;  %p591_p0 = scmp.ge.s32.totalorder %s652_s30, 1  ;;  %s652_s30 = sphi %s704_s30, %s19_s30  }
   0x2   : > { %p288_p1 = scmp.lt.s32.totalorder %s652_s30, 5 }
   0x4   : > { %p289_p2 = pnand %p591_p0, %p288_p1 }
   0x5   : > { %s592_s15 = sshll.u32 (!%p289_p2), %s587_s10, 1 }
   0x6   : > { %292 = sbr.rel (%p289_p2) target bundleno = 612 (0x264), region = 56  ;;  %p325_p3 = scmp.lt.s32.totalorder (!%p289_p2), %s592_s15, 7 }
   0xb   : > { %v341_v0 = vld [vmem:[%s780_s1 + $0x18] sm:$0xf]  ;;  %vm353_vm0 = vcmask 1043456   ;;  %v340_v1 = vld [vmem:[%s780_s1 + $0x10] sm:$0xff]  ;;  %v339_v2 = vld [vmem:[%s780_s1 + $0x8] sm:$0xff]  ;;  %s790_s15 = smov (!%p325_p3, %s592_s15), 7 }
   0xc   : > { %596 = vmatpush.msk.msra.mxu0 %vm353_vm0, %v341_v0  ;;  %v338_v3 = vld [vmem:[%s780_s1] sm:$0xff]  ;;  %s593_s20 = sshll.u32 %s790_s15, 3  ;;  %vm346_vm1 = vcmask 228352   ;;  %v393_v6 = vld [vmem:[%s782_s3 + $0x18] sm:$0xf]  ;;  %v392_v7 = vld [vmem:[%s782_s3 + $0x10] sm:$0xff] }
   0xd   : > { %s328_s23 = scalar_lea.vmem %s779_s0, %s593_s20  ;;  %599 = vmatpush.msk.msra.mxu1 %vm353_vm0, %v393_v6  ;;  %v391_v8 = vld [vmem:[%s782_s3 + $0x8] sm:$0xff]  ;;  %v390_v9 = vld [vmem:[%s782_s3] sm:$0xff]  ;;  %vm453_vm2 = vcmask 1045504   ;;  %vm446_vm3 = vcmask 113664   ;;  %vm502_vm4 = vcmask 1046528   ;;  %vm495_vm5 = vcmask 56320   ;;  %s334_s10 = scalar_lea.vmem %s788_s9, %s593_s20 }
   0xe   : > { %370 = vmatpush.msra.mxu0 %v340_v1  ;;  %v336_v4 = vld [vmem:[%s328_s23] sm:$0xff]  ;;  %v337_v5 = vld [vmem:[%s328_s23 + $0x8] sm:$0xff] }
   0xf   : > { %420 = vmatpush.msra.mxu1 %v392_v7  ;;  %v618_v10 = vld [vmem:[%s781_s2] ss:$0 sm:$0xff]  ;;  %v441_v25 = vld [vmem:[%s784_s5 + $0x8] sm:$0x3f] }
  0x10   : > { %371 = vmatpush.msra.mxu0 %v339_v2  ;;  %602 = vmatpush.msk.msra.mxu2 %vm453_vm2, %v441_v25  ;;  %v440_v26 = vld [vmem:[%s784_s5] sm:$0xff] }
  0x11   : > { %421 = vmatpush.msra.mxu1 %v391_v8  ;;  %v619_v27 = vld [vmem:[%s783_s4] ss:$0 sm:$0xff] }
  0x12   : > { %372 = vmatpush.msra.mxu0 %v338_v3  ;;  %472 = vmatpush.msra.mxu2 %v440_v26  ;;  %v490_v42 = vld [vmem:[%s786_s7] sm:$0x7f] }
  0x13   : > { %597 = vmatmul.msk.f32.vlgmr.msra.gmra.mxu0 %vm346_vm1, %v336_v4  ;;  %422 = vmatpush.msra.mxu1 %v390_v9  ;;  %v620_v43 = vld [vmem:[%s785_s6] ss:$0 sm:$0xff] }
  0x14   : > { %605 = vmatpush.msk.msra.mxu3 %vm502_vm4, %v490_v42  ;;  %v621_v58 = vld [vmem:[%s787_s8] ss:$0 sm:$0xff] }
  0x1b   : > { %598 = vmatmul.msk.f32.gmra.mxu0 %vm346_vm1, %v337_v5 }
  0x90   : > { %v374_v11 = vpop.f32.mrf.mxu0 }
  0x91   : > { %v375_v12 = vadd.f32 %v618_v10, %v374_v11 }
  0x93   : > { %v380_v13 = vsub.f32 0.0, %v375_v12 }
  0x95   : > { %v382_v14 = vmul.f32 1.442695, %v380_v13 }
  0x97   : > { %622 = vpow2.f32 %v382_v14 }
  0x98   : > { %v377_v15 = vpop.f32.mrf.mxu0 }
  0x99   : > { %v378_v16 = vadd.f32 %v618_v10, %v377_v15 }
  0x9b   : > { %v381_v17 = vsub.f32 0.0, %v378_v16 }
  0x9d   : > { %v623_v18 = vpop.eup %622  ;;  %v384_v19 = vmul.f32 1.442695, %v381_v17 }
  0x9e   : > { %v386_v20 = vadd.f32 1.0, %v623_v18 }
  0x9f   : > { %624 = vpow2.f32 %v384_v19 }
  0xa0   : > { %626 = vrcp.f32 %v386_v20 }
  0xa5   : > { %v625_v21 = vpop.eup %624 }
  0xa6   : > { %v627_v22 = vpop.eup %626  ;;  %v387_v23 = vadd.f32 1.0, %v625_v21 }
  0xa7   : > { %600 = vmatmul.msk.f32.vlgmr.msra.gmra.mxu1 %vm346_vm1, %v627_v22 }
  0xa8   : > { %628 = vrcp.f32 %v387_v23 }
  0xae   : > { %v629_v24 = vpop.eup %628 }
  0xaf   : > { %601 = vmatmul.msk.f32.gmra.mxu1 %vm346_vm1, %v629_v24 }
 0x124   : > { %v424_v28 = vpop.f32.mrf.mxu1 }
 0x125   : > { %v425_v29 = vadd.f32 %v619_v27, %v424_v28 }
 0x127   : > { %v430_v30 = vsub.f32 0.0, %v425_v29 }
 0x129   : > { %v432_v31 = vmul.f32 1.442695, %v430_v30 }
 0x12b   : > { %630 = vpow2.f32 %v432_v31 }
 0x12c   : > { %v427_v32 = vpop.f32.mrf.mxu1 }
 0x12d   : > { %v428_v33 = vadd.f32 %v619_v27, %v427_v32 }
 0x12f   : > { %v431_v34 = vsub.f32 0.0, %v428_v33 }
 0x131   : > { %v631_v35 = vpop.eup %630  ;;  %v434_v36 = vmul.f32 1.442695, %v431_v34 }
 0x132   : > { %v436_v37 = vadd.f32 1.0, %v631_v35 }
 0x133   : > { %632 = vpow2.f32 %v434_v36 }
 0x134   : > { %634 = vrcp.f32 %v436_v37 }
 0x139   : > { %v633_v38 = vpop.eup %632 }
 0x13a   : > { %v635_v39 = vpop.eup %634  ;;  %v437_v40 = vadd.f32 1.0, %v633_v38 }
 0x13b   : > { %603 = vmatmul.msk.f32.vlgmr.msra.gmra.mxu2 %vm446_vm3, %v635_v39 }
 0x13c   : > { %636 = vrcp.f32 %v437_v40 }
 0x142   : > { %v637_v41 = vpop.eup %636 }
 0x143   : > { %604 = vmatmul.msk.f32.gmra.mxu2 %vm446_vm3, %v637_v41 }
 0x1be   : > { %v474_v44 = vpop.f32.mrf.mxu2 }
 0x1bf   : > { %v475_v45 = vadd.f32 %v620_v43, %v474_v44 }
 0x1c1   : > { %v480_v46 = vsub.f32 0.0, %v475_v45 }
 0x1c3   : > { %v482_v47 = vmul.f32 1.442695, %v480_v46 }
 0x1c5   : > { %638 = vpow2.f32 %v482_v47 }
 0x1c6   : > { %v477_v48 = vpop.f32.mrf.mxu2 }
 0x1c7   : > { %v478_v49 = vadd.f32 %v620_v43, %v477_v48 }
 0x1c9   : > { %v481_v50 = vsub.f32 0.0, %v478_v49 }
 0x1cb   : > { %v639_v51 = vpop.eup %638  ;;  %v484_v52 = vmul.f32 1.442695, %v481_v50 }
 0x1cc   : > { %v486_v53 = vadd.f32 1.0, %v639_v51 }
 0x1cd   : > { %640 = vpow2.f32 %v484_v52 }
 0x1ce   : > { %642 = vrcp.f32 %v486_v53 }
 0x1d3   : > { %v641_v54 = vpop.eup %640 }
 0x1d4   : > { %v643_v55 = vpop.eup %642  ;;  %v487_v56 = vadd.f32 1.0, %v641_v54 }
 0x1d5   : > { %606 = vmatmul.msk.f32.vlgmr.msra.gmra.mxu3 %vm495_vm5, %v643_v55 }
 0x1d6   : > { %644 = vrcp.f32 %v487_v56 }
 0x1dc   : > { %v645_v57 = vpop.eup %644 }
 0x1dd   : > { %607 = vmatmul.msk.f32.gmra.mxu3 %vm495_vm5, %v645_v57 }
 0x258   : > { %v523_v59 = vpop.f32.mrf.mxu3 }
 0x259   : > { %v524_v60 = vadd.f32 %v621_v58, %v523_v59 }
 0x25b   : > { %529 = vst [vmem:[%s334_s10] sm:$0xff] %v524_v60 }
 0x260   : > { %v526_v61 = vpop.f32.mrf.mxu3 }
 0x261   : > { %v527_v62 = vadd.f32 %v621_v58, %v526_v61 }
 0x263   : > { %530 = vst [vmem:[%s334_s10 + $0x8] sm:$0xff] %v527_v62 }
 0x264 PF: > { %s19_s30 = sadd.s32 1, %s652_s30  }
 0x265   : > { %p16_p4 = scmp.ge.s32.totalorder %s19_s30, 6  }
 0x267   :  { %18 = sbr.rel (!%p16_p4) target bundleno = 1 (0x1), region = 86 }

</bundles_post_ra>
